<compile_context>
chip_gen: v6e
topology: v6e:2x2x1
jax: 0.10.0
libtpu: 0.0.40
codegen_flags: <defaults>
</compile_context>

<pallas_src>
import math

import jax
import jax.numpy as jnp
from jax.experimental import pallas as pl
from jax.experimental.pallas import tpu as pltpu


def _combined_head_kernel(xs_ref, xr_ref, ws_ref, bs_ref, wr_ref, br_ref, o_ref):
    # xs_ref / xr_ref : (1, Cin, tile)  seg / reg backbone feature tiles (pixels on lanes)
    # ws_ref: (classes, Cin)   bs_ref: (classes, 1)   (bias in f32)
    # wr_ref: (reg_ch, Cin)    br_ref: (reg_ch, 1)
    # o_ref : (1, classes + reg_ch, tile)
    classes = ws_ref.shape[0]

    # --- segmentation head: 1x1 conv + channel log-softmax (all f32) ---
    xs = xs_ref[0]                                                    # (Cin, tile)
    ys = jnp.dot(ws_ref[...], xs, preferred_element_type=jnp.float32) + bs_ref[...]
    m = jnp.max(ys, axis=0, keepdims=True)
    ys = ys - m                                                       # reuse buffer (fewer live vregs)
    lse = jnp.log(jnp.sum(jnp.exp(ys), axis=0, keepdims=True))
    o_ref[0, :classes, :] = (ys - lse).astype(o_ref.dtype)            # slice store #1

    # --- regression head: 1x1 conv (computed after the seg store to cut live ranges) ---
    xr = xr_ref[0]
    yr = jnp.dot(wr_ref[...], xr, preferred_element_type=jnp.float32) + br_ref[...]
    o_ref[0, classes:, :] = yr.astype(o_ref.dtype)                    # slice store #2


def _vmem_capacity_bytes():
    try:
        return int(pltpu.get_tpu_info().vmem_capacity_bytes)
    except Exception:
        return 64 << 20  # conservative fallback (v7x physical VMEM per TC)


def drn_downsampled_combined_forward(feat_seg, feat_reg, seg_weight, seg_bias,
                                     reg_weight, reg_bias, *, tile_hw=4096):
    """Head path of DRNDownsampledCombined.

    feat_seg / feat_reg : (N, Cin, H, W) feature maps from seg.base(x) / reg.base(x)
    seg_weight: (classes, Cin, 1, 1),  seg_bias: (classes,)
    reg_weight: (2, Cin, 1, 1),        reg_bias: (2,)
    returns   : (N, classes + 2, H, W) == cat(logsoftmax(seg), reg) along channels.
    Works with f32 or bf16 activations (accumulation / softmax stay f32).
    """
    n, cin, h, w = feat_seg.shape
    assert feat_reg.shape == feat_seg.shape
    classes = seg_weight.shape[0]
    reg_ch = reg_weight.shape[0]
    out_c = classes + reg_ch
    hw = h * w
    act_dtype = feat_seg.dtype
    itemsize = jnp.dtype(act_dtype).itemsize

    # Free reshapes (no data movement): NCHW -> (N, Cin, H*W); weights -> 2-D matrices.
    xs = feat_seg.reshape(n, cin, hw)
    xr = feat_reg.reshape(n, cin, hw)
    ws = seg_weight.reshape(classes, cin).astype(act_dtype)
    bs = seg_bias.reshape(classes, 1).astype(jnp.float32)
    wr = reg_weight.reshape(reg_ch, cin).astype(act_dtype)
    br = reg_bias.reshape(reg_ch, 1).astype(jnp.float32)

    # ---- tile selection (lane axis), generation-aware VMEM budget ----
    vmem_cap = _vmem_capacity_bytes()
    vmem_budget = int(0.45 * vmem_cap)                       # budget for pipelined blocks
    floor = 1024 if itemsize < 4 else 512                    # raised lane floor (bf16 / f32)
    desired = max(floor, (max(tile_hw, 128) // 128) * 128)
    bytes_per_lane = (2 * cin + out_c) * itemsize * 2        # 2 inputs + 1 output, double-buffered
    fit = max(128, (vmem_budget // bytes_per_lane) // 128 * 128)
    tile = max(128, min(desired, fit))
    if hw <= tile:
        tile = hw                                            # full H*W (may be non-128-multiple: OK)
    num_tiles = pl.cdiv(hw, tile)                            # partial tail tile masked by Pallas

    # Guarantee >= 2 parallel grid points when possible (keeps both v7x TCs busy).
    if n * num_tiles < 2 and hw >= 256:
        tile = ((((hw + 1) // 2) + 127) // 128) * 128
        num_tiles = pl.cdiv(hw, tile)

    # VMEM limit: double-buffered blocks + resident weights + slack, capped at half of
    # physical VMEM (32 MiB on v7x, 64 MiB on v5e/v6e).
    block_bytes = (2 * cin + out_c) * tile * itemsize
    weight_bytes = out_c * cin * itemsize + out_c * 4
    vmem_est = 2 * block_bytes + 2 * weight_bytes + (2 << 20)
    vmem_limit = int(min(max(vmem_est, 16 << 20), vmem_cap // 2))

    def _call(weight_pipeline_mode):
        wkw = {} if weight_pipeline_mode is None else {"pipeline_mode": weight_pipeline_mode}
        return pl.pallas_call(
            _combined_head_kernel,
            out_shape=jax.ShapeDtypeStruct((n, out_c, hw), act_dtype),
            grid_spec=pltpu.PrefetchScalarGridSpec(
                num_scalar_prefetch=0,
                grid=(n, num_tiles),
                in_specs=[
                    pl.BlockSpec((1, cin, tile), lambda b, t: (b, 0, t)),
                    pl.BlockSpec((1, cin, tile), lambda b, t: (b, 0, t)),
                    pl.BlockSpec((classes, cin), lambda b, t: (0, 0), **wkw),
                    pl.BlockSpec((classes, 1), lambda b, t: (0, 0), **wkw),
                    pl.BlockSpec((reg_ch, cin), lambda b, t: (0, 0), **wkw),
                    pl.BlockSpec((reg_ch, 1), lambda b, t: (0, 0), **wkw),
                ],
                out_specs=pl.BlockSpec((1, out_c, tile), lambda b, t: (b, 0, t)),
            ),
            compiler_params=pltpu.CompilerParams(
                dimension_semantics=("parallel", "parallel"),
                vmem_limit_bytes=vmem_limit,
            ),
        )(xs, xr, ws, bs, wr, br)

    try:
        # Weights / biases are resident (constant index_map) -> single-buffer them.
        out = _call(pl.Buffered(1))
    except Exception:
        # Fallback if this JAX build rejects single-buffered resident blocks.
        out = _call(None)

    # Free reshape back to NCHW.
    return out.reshape(n, out_c, h, w)


def _reference_forward(feat_seg, feat_reg, seg_weight, seg_bias, reg_weight, reg_bias):
    classes = seg_weight.shape[0]
    reg_ch = reg_weight.shape[0]
    cin = feat_seg.shape[1]
    s = jnp.einsum("nchw,kc->nkhw", feat_seg, seg_weight.reshape(classes, cin))
    s = s + seg_bias[None, :, None, None]
    s = jax.nn.log_softmax(s, axis=1)
    r = jnp.einsum("nchw,kc->nkhw", feat_reg, reg_weight.reshape(reg_ch, cin))
    r = r + reg_bias[None, :, None, None]
    return jnp.concatenate([s, r], axis=1)


if __name__ == "__main__":
    key = jax.random.PRNGKey(0)
    k_fs, k_fr, k_ws, k_wr, k_br = jax.random.split(key, 5)

    # Small shapes consistent with the module: backbone feature maps are
    # (N, out_dim, H, W); seg maps out_dim -> classes, regression maps out_dim -> 2.
    N, OUT_DIM, H, W = 2, 32, 16, 16
    CLASSES = 8

    # TODO(synk): the DRN backbones are external; their outputs are modelled as inputs.
    feat_seg = jax.random.normal(k_fs, (N, OUT_DIM, H, W), dtype=jnp.float32)
    feat_reg = jax.random.normal(k_fr, (N, OUT_DIM, H, W), dtype=jnp.float32)

    # seg init mirrors the module: weight ~ N(0, sqrt(2/n)) with n = 1*1*classes, bias = 0.
    std = math.sqrt(2.0 / (1 * 1 * CLASSES))
    seg_weight = std * jax.random.normal(k_ws, (CLASSES, OUT_DIM, 1, 1), dtype=jnp.float32)
    seg_bias = jnp.zeros((CLASSES,), dtype=jnp.float32)
    # regression head (default Conv2d-style small init).
    reg_weight = 0.05 * jax.random.normal(k_wr, (2, OUT_DIM, 1, 1), dtype=jnp.float32)
    reg_bias = 0.01 * jax.random.normal(k_br, (2,), dtype=jnp.float32)

    out = drn_downsampled_combined_forward(
        feat_seg, feat_reg, seg_weight, seg_bias, reg_weight, reg_bias)
    out = jax.block_until_ready(out)

    ref = _reference_forward(feat_seg, feat_reg, seg_weight, seg_bias, reg_weight, reg_bias)
    assert out.shape == (N, CLASSES + 2, H, W)
    assert jnp.allclose(out, ref, atol=1e-4, rtol=1e-4)

    print("KERNEL_OK")
</pallas_src>

<mosaic_0001>
module attributes {stable_mosaic.version = 11 : i64} {
  func.func @_combined_head_kernel(%arg0: i32, %arg1: i32, %arg2: memref<1x32x256xf32, #tpu.memory_space<vmem>>, %arg3: memref<1x32x256xf32, #tpu.memory_space<vmem>>, %arg4: memref<8x32xf32, #tpu.memory_space<vmem>>, %arg5: memref<8x1xf32, #tpu.memory_space<vmem>>, %arg6: memref<2x32xf32, #tpu.memory_space<vmem>>, %arg7: memref<2x1xf32, #tpu.memory_space<vmem>>, %arg8: memref<1x10x256xf32, #tpu.memory_space<vmem>>) attributes {dimension_semantics = [#tpu.dimension_semantics<parallel>, #tpu.dimension_semantics<parallel>], iteration_bounds = array<i64: 2, 1>, scalar_prefetch = 0 : i64, scratch_operands = 0 : i64, tpu.core_type = #tpu.core_type<tc>, window_params = [{transform_indices = @transform_0, window_bounds = array<i64: 1, 32, 256>}, {transform_indices = @transform_1, window_bounds = array<i64: 1, 32, 256>}, {pipeline_mode = #tpu.pipeline_mode<synchronous>, transform_indices = @transform_2, window_bounds = array<i64: 8, 32>}, {pipeline_mode = #tpu.pipeline_mode<synchronous>, transform_indices = @transform_3, window_bounds = array<i64: 8, 1>}, {pipeline_mode = #tpu.pipeline_mode<synchronous>, transform_indices = @transform_4, window_bounds = array<i64: 2, 32>}, {pipeline_mode = #tpu.pipeline_mode<synchronous>, transform_indices = @transform_5, window_bounds = array<i64: 2, 1>}, {transform_indices = @transform_6, window_bounds = array<i64: 1, 10, 256>}]} {
    %c0 = arith.constant 0 : index
    %c0_0 = arith.constant 0 : index
    %c0_1 = arith.constant 0 : index
    %0 = vector.load %arg2[%c0, %c0_0, %c0_1] : memref<1x32x256xf32, #tpu.memory_space<vmem>>, vector<1x32x256xf32>
    %1 = vector.shape_cast %0 : vector<1x32x256xf32> to vector<32x256xf32>
    %c0_2 = arith.constant 0 : index
    %c0_3 = arith.constant 0 : index
    %2 = vector.load %arg4[%c0_2, %c0_3] : memref<8x32xf32, #tpu.memory_space<vmem>>, vector<8x32xf32>
    %cst = arith.constant dense<0.000000e+00> : vector<8x256xf32>
    %3 = tpu.matmul %2, %1, %cst {dimension_numbers = #tpu.dot_dimension_numbers<[1], [0], [0], [1], [0, 0, 1, 1], [], []>} : vector<8x32xf32>, vector<32x256xf32>, vector<8x256xf32> -> vector<8x256xf32>
    %c0_4 = arith.constant 0 : index
    %c0_5 = arith.constant 0 : index
    %4 = vector.load %arg5[%c0_4, %c0_5] : memref<8x1xf32, #tpu.memory_space<vmem>>, vector<8x1xf32>
    %5 = vector.broadcast %4 : vector<8x1xf32> to vector<8x256xf32>
    %6 = arith.addf %3, %5 : vector<8x256xf32>
    %cst_6 = arith.constant dense<0xFF800000> : vector<256xf32>
    %7 = vector.multi_reduction <maximumf>, %6, %cst_6 [0] : vector<8x256xf32> to vector<256xf32>
    %8 = vector.shape_cast %7 : vector<256xf32> to vector<1x256xf32>
    %9 = vector.broadcast %8 : vector<1x256xf32> to vector<8x256xf32>
    %10 = arith.subf %6, %9 : vector<8x256xf32>
    %11 = math.exp %10 : vector<8x256xf32>
    %cst_7 = arith.constant dense<0.000000e+00> : vector<256xf32>
    %12 = vector.multi_reduction <add>, %11, %cst_7 [0] : vector<8x256xf32> to vector<256xf32>
    %13 = vector.shape_cast %12 : vector<256xf32> to vector<1x256xf32>
    %14 = math.log %13 : vector<1x256xf32>
    %15 = vector.broadcast %14 : vector<1x256xf32> to vector<8x256xf32>
    %16 = arith.subf %10, %15 : vector<8x256xf32>
    %c0_8 = arith.constant 0 : index
    %c0_9 = arith.constant 0 : index
    %c0_10 = arith.constant 0 : index
    %17 = vector.load %arg8[%c0_8, %c0_9, %c0_10] : memref<1x10x256xf32, #tpu.memory_space<vmem>>, vector<1x8x256xf32>
    %18 = vector.shape_cast %17 : vector<1x8x256xf32> to vector<8x256xf32>
    %19 = vector.shape_cast %16 : vector<8x256xf32> to vector<1x8x256xf32>
    tpu.vector_store %arg8[%c0_8, %c0_9, %c0_10], %19 {strides = array<i32>} : memref<1x10x256xf32, #tpu.memory_space<vmem>>, vector<1x8x256xf32>,
    %c0_11 = arith.constant 0 : index
    %c0_12 = arith.constant 0 : index
    %c0_13 = arith.constant 0 : index
    %20 = vector.load %arg3[%c0_11, %c0_12, %c0_13] : memref<1x32x256xf32, #tpu.memory_space<vmem>>, vector<1x32x256xf32>
    %21 = vector.shape_cast %20 : vector<1x32x256xf32> to vector<32x256xf32>
    %c0_14 = arith.constant 0 : index
    %c0_15 = arith.constant 0 : index
    %22 = vector.load %arg6[%c0_14, %c0_15] : memref<2x32xf32, #tpu.memory_space<vmem>>, vector<2x32xf32>
    %cst_16 = arith.constant dense<0.000000e+00> : vector<2x256xf32>
    %23 = tpu.matmul %22, %21, %cst_16 {dimension_numbers = #tpu.dot_dimension_numbers<[1], [0], [0], [1], [0, 0, 1, 1], [], []>} : vector<2x32xf32>, vector<32x256xf32>, vector<2x256xf32> -> vector<2x256xf32>
    %c0_17 = arith.constant 0 : index
    %c0_18 = arith.constant 0 : index
    %24 = vector.load %arg7[%c0_17, %c0_18] : memref<2x1xf32, #tpu.memory_space<vmem>>, vector<2x1xf32>
    %25 = vector.broadcast %24 : vector<2x1xf32> to vector<2x256xf32>
    %26 = arith.addf %23, %25 : vector<2x256xf32>
    %c0_19 = arith.constant 0 : index
    %c8 = arith.constant 8 : index
    %c0_20 = arith.constant 0 : index
    %27 = vector.load %arg8[%c0_19, %c8, %c0_20] : memref<1x10x256xf32, #tpu.memory_space<vmem>>, vector<1x2x256xf32>
    %28 = vector.shape_cast %27 : vector<1x2x256xf32> to vector<2x256xf32>
    %29 = vector.shape_cast %26 : vector<2x256xf32> to vector<1x2x256xf32>
    tpu.vector_store %arg8[%c0_19, %c8, %c0_20], %29 {strides = array<i32>} : memref<1x10x256xf32, #tpu.memory_space<vmem>>, vector<1x2x256xf32>,
    return
  }
  func.func @transform_0(%arg0: i32, %arg1: i32) -> (i32, i32, i32) {
    %c0_i32 = arith.constant 0 : i32
    %c0_i32_0 = arith.constant 0 : i32
    return %arg0, %c0_i32, %arg1 : i32, i32, i32
  }
  func.func @transform_1(%arg0: i32, %arg1: i32) -> (i32, i32, i32) {
    %c0_i32 = arith.constant 0 : i32
    %c0_i32_0 = arith.constant 0 : i32
    return %arg0, %c0_i32, %arg1 : i32, i32, i32
  }
  func.func @transform_2(%arg0: i32, %arg1: i32) -> (i32, i32) {
    %c0_i32 = arith.constant 0 : i32
    %c0_i32_0 = arith.constant 0 : i32
    %c0_i32_1 = arith.constant 0 : i32
    return %c0_i32, %c0_i32_0 : i32, i32
  }
  func.func @transform_3(%arg0: i32, %arg1: i32) -> (i32, i32) {
    %c0_i32 = arith.constant 0 : i32
    %c0_i32_0 = arith.constant 0 : i32
    %c0_i32_1 = arith.constant 0 : i32
    return %c0_i32, %c0_i32_0 : i32, i32
  }
  func.func @transform_4(%arg0: i32, %arg1: i32) -> (i32, i32) {
    %c0_i32 = arith.constant 0 : i32
    %c0_i32_0 = arith.constant 0 : i32
    %c0_i32_1 = arith.constant 0 : i32
    return %c0_i32, %c0_i32_0 : i32, i32
  }
  func.func @transform_5(%arg0: i32, %arg1: i32) -> (i32, i32) {
    %c0_i32 = arith.constant 0 : i32
    %c0_i32_0 = arith.constant 0 : i32
    %c0_i32_1 = arith.constant 0 : i32
    return %c0_i32, %c0_i32_0 : i32, i32
  }
  func.func @transform_6(%arg0: i32, %arg1: i32) -> (i32, i32, i32) {
    %c0_i32 = arith.constant 0 : i32
    %c0_i32_0 = arith.constant 0 : i32
    return %arg0, %c0_i32, %arg1 : i32, i32, i32
  }
}

module attributes {stable_mosaic.version = 11 : i64} {
  func.func @_combined_head_kernel(%arg0: i32, %arg1: i32, %arg2: memref<1x32x256xf32, #tpu.memory_space<vmem>>, %arg3: memref<1x32x256xf32, #tpu.memory_space<vmem>>, %arg4: memref<8x32xf32, #tpu.memory_space<vmem>>, %arg5: memref<8x1xf32, #tpu.memory_space<vmem>>, %arg6: memref<2x32xf32, #tpu.memory_space<vmem>>, %arg7: memref<2x1xf32, #tpu.memory_space<vmem>>, %arg8: memref<1x10x256xf32, #tpu.memory_space<vmem>>) attributes {dimension_semantics = [#tpu.dimension_semantics<parallel>, #tpu.dimension_semantics<parallel>], iteration_bounds = array<i64: 2, 1>, scalar_prefetch = 0 : i64, scratch_operands = 0 : i64, tpu.core_type = #tpu.core_type<tc>, window_params = [{transform_indices = @transform_0, window_bounds = array<i64: 1, 32, 256>}, {transform_indices = @transform_1, window_bounds = array<i64: 1, 32, 256>}, {pipeline_mode = #tpu.pipeline_mode<synchronous>, transform_indices = @transform_2, window_bounds = array<i64: 8, 32>}, {pipeline_mode = #tpu.pipeline_mode<synchronous>, transform_indices = @transform_3, window_bounds = array<i64: 8, 1>}, {pipeline_mode = #tpu.pipeline_mode<synchronous>, transform_indices = @transform_4, window_bounds = array<i64: 2, 32>}, {pipeline_mode = #tpu.pipeline_mode<synchronous>, transform_indices = @transform_5, window_bounds = array<i64: 2, 1>}, {transform_indices = @transform_6, window_bounds = array<i64: 1, 10, 256>}]} {
    %c0 = arith.constant 0 : index
    %c0_0 = arith.constant 0 : index
    %c0_1 = arith.constant 0 : index
    %0 = vector.load %arg2[%c0, %c0_0, %c0_1] : memref<1x32x256xf32, #tpu.memory_space<vmem>>, vector<1x32x256xf32>
    %1 = vector.shape_cast %0 : vector<1x32x256xf32> to vector<32x256xf32>
    %c0_2 = arith.constant 0 : index
    %c0_3 = arith.constant 0 : index
    %2 = vector.load %arg4[%c0_2, %c0_3] : memref<8x32xf32, #tpu.memory_space<vmem>>, vector<8x32xf32>
    %cst = arith.constant dense<0.000000e+00> : vector<8x256xf32>
    %3 = tpu.matmul %2, %1, %cst {dimension_numbers = #tpu.dot_dimension_numbers<[1], [0], [0], [1], [0, 0, 1, 1], [], []>} : vector<8x32xf32>, vector<32x256xf32>, vector<8x256xf32> -> vector<8x256xf32>
    %c0_4 = arith.constant 0 : index
    %c0_5 = arith.constant 0 : index
    %4 = vector.load %arg5[%c0_4, %c0_5] : memref<8x1xf32, #tpu.memory_space<vmem>>, vector<8x1xf32>
    %5 = vector.broadcast %4 : vector<8x1xf32> to vector<8x256xf32>
    %6 = arith.addf %3, %5 : vector<8x256xf32>
    %cst_6 = arith.constant dense<0xFF800000> : vector<256xf32>
    %7 = vector.multi_reduction <maximumf>, %6, %cst_6 [0] : vector<8x256xf32> to vector<256xf32>
    %8 = vector.shape_cast %7 : vector<256xf32> to vector<1x256xf32>
    %9 = vector.broadcast %8 : vector<1x256xf32> to vector<8x256xf32>
    %10 = arith.subf %6, %9 : vector<8x256xf32>
    %11 = math.exp %10 : vector<8x256xf32>
    %cst_7 = arith.constant dense<0.000000e+00> : vector<256xf32>
    %12 = vector.multi_reduction <add>, %11, %cst_7 [0] : vector<8x256xf32> to vector<256xf32>
    %13 = vector.shape_cast %12 : vector<256xf32> to vector<1x256xf32>
    %14 = math.log %13 : vector<1x256xf32>
    %15 = vector.broadcast %14 : vector<1x256xf32> to vector<8x256xf32>
    %16 = arith.subf %10, %15 : vector<8x256xf32>
    %c0_8 = arith.constant 0 : index
    %c0_9 = arith.constant 0 : index
    %c0_10 = arith.constant 0 : index
    %17 = vector.load %arg8[%c0_8, %c0_9, %c0_10] : memref<1x10x256xf32, #tpu.memory_space<vmem>>, vector<1x8x256xf32>
    %18 = vector.shape_cast %17 : vector<1x8x256xf32> to vector<8x256xf32>
    %19 = vector.shape_cast %16 : vector<8x256xf32> to vector<1x8x256xf32>
    tpu.vector_store %arg8[%c0_8, %c0_9, %c0_10], %19 {strides = array<i32>} : memref<1x10x256xf32, #tpu.memory_space<vmem>>, vector<1x8x256xf32>,
    %c0_11 = arith.constant 0 : index
    %c0_12 = arith.constant 0 : index
    %c0_13 = arith.constant 0 : index
    %20 = vector.load %arg3[%c0_11, %c0_12, %c0_13] : memref<1x32x256xf32, #tpu.memory_space<vmem>>, vector<1x32x256xf32>
    %21 = vector.shape_cast %20 : vector<1x32x256xf32> to vector<32x256xf32>
    %c0_14 = arith.constant 0 : index
    %c0_15 = arith.constant 0 : index
    %22 = vector.load %arg6[%c0_14, %c0_15] : memref<2x32xf32, #tpu.memory_space<vmem>>, vector<2x32xf32>
    %cst_16 = arith.constant dense<0.000000e+00> : vector<2x256xf32>
    %23 = tpu.matmul %22, %21, %cst_16 {dimension_numbers = #tpu.dot_dimension_numbers<[1], [0], [0], [1], [0, 0, 1, 1], [], []>} : vector<2x32xf32>, vector<32x256xf32>, vector<2x256xf32> -> vector<2x256xf32>
    %c0_17 = arith.constant 0 : index
    %c0_18 = arith.constant 0 : index
    %24 = vector.load %arg7[%c0_17, %c0_18] : memref<2x1xf32, #tpu.memory_space<vmem>>, vector<2x1xf32>
    %25 = vector.broadcast %24 : vector<2x1xf32> to vector<2x256xf32>
    %26 = arith.addf %23, %25 : vector<2x256xf32>
    %c0_19 = arith.constant 0 : index
    %c8 = arith.constant 8 : index
    %c0_20 = arith.constant 0 : index
    %27 = vector.load %arg8[%c0_19, %c8, %c0_20] : memref<1x10x256xf32, #tpu.memory_space<vmem>>, vector<1x2x256xf32>
    %28 = vector.shape_cast %27 : vector<1x2x256xf32> to vector<2x256xf32>
    %29 = vector.shape_cast %26 : vector<2x256xf32> to vector<1x2x256xf32>
    tpu.vector_store %arg8[%c0_19, %c8, %c0_20], %29 {strides = array<i32>} : memref<1x10x256xf32, #tpu.memory_space<vmem>>, vector<1x2x256xf32>,
    return
  }
  func.func @transform_0(%arg0: i32, %arg1: i32) -> (i32, i32, i32) {
    %c0_i32 = arith.constant 0 : i32
    %c0_i32_0 = arith.constant 0 : i32
    return %arg0, %c0_i32, %arg1 : i32, i32, i32
  }
  func.func @transform_1(%arg0: i32, %arg1: i32) -> (i32, i32, i32) {
    %c0_i32 = arith.constant 0 : i32
    %c0_i32_0 = arith.constant 0 : i32
    return %arg0, %c0_i32, %arg1 : i32, i32, i32
  }
  func.func @transform_2(%arg0: i32, %arg1: i32) -> (i32, i32) {
    %c0_i32 = arith.constant 0 : i32
    %c0_i32_0 = arith.constant 0 : i32
    %c0_i32_1 = arith.constant 0 : i32
    return %c0_i32, %c0_i32_0 : i32, i32
  }
  func.func @transform_3(%arg0: i32, %arg1: i32) -> (i32, i32) {
    %c0_i32 = arith.constant 0 : i32
    %c0_i32_0 = arith.constant 0 : i32
    %c0_i32_1 = arith.constant 0 : i32
    return %c0_i32, %c0_i32_0 : i32, i32
  }
  func.func @transform_4(%arg0: i32, %arg1: i32) -> (i32, i32) {
    %c0_i32 = arith.constant 0 : i32
    %c0_i32_0 = arith.constant 0 : i32
    %c0_i32_1 = arith.constant 0 : i32
    return %c0_i32, %c0_i32_0 : i32, i32
  }
  func.func @transform_5(%arg0: i32, %arg1: i32) -> (i32, i32) {
    %c0_i32 = arith.constant 0 : i32
    %c0_i32_0 = arith.constant 0 : i32
    %c0_i32_1 = arith.constant 0 : i32
    return %c0_i32, %c0_i32_0 : i32, i32
  }
  func.func @transform_6(%arg0: i32, %arg1: i32) -> (i32, i32, i32) {
    %c0_i32 = arith.constant 0 : i32
    %c0_i32_0 = arith.constant 0 : i32
    return %arg0, %c0_i32, %arg1 : i32, i32, i32
  }
}

</mosaic_0001>

<bundles_post_ra>
// kernel: tpu_custom_call.1
= control target key start
LH: loop header
LB: loop body
LE: loop exit
PB: predicated region body
PF: predicated region fallthrough
CT: control target
= control target key end

     0   :  { %s1097_s0 = inlined_call_operand.hbm [shape: f32[2,32,256], index: 0, kind: input, shape index: {}]   ;;  %s1098_s1 = inlined_call_operand.hbm [shape: f32[2,32,256], index: 1, kind: input, shape index: {}]   ;;  %s1099_s2 = inlined_call_operand.vmem [shape: f32[8,32], index: 2, kind: input, shape index: {}]   ;;  %s1100_s3 = inlined_call_operand.vmem [shape: f32[8,1], index: 3, kind: input, shape index: {}]   ;;  %s1101_s4 = inlined_call_operand.vmem [shape: f32[2,32], index: 4, kind: input, shape index: {}]   ;;  %s1102_s5 = inlined_call_operand.vmem [shape: f32[2,1], index: 5, kind: input, shape index: {}]   ;;  %s1103_s6 = inlined_call_operand.vmem [shape: f32[2,10,256], index: 6, kind: output, shape index: {}]  }
   0x1   :  { %1104 = sst [smem:[#allocation8_spill]] %s1097_s0 }
   0x2   :  { %11 = vsyncpa [#allocation3], 0 }
   0x3   :  { %13 = vsyncpa [#allocation3 + $0x1], 0 }
   0x4   :  { %14 = vsyncpa [#allocation5], 0 }
   0x5   :  { %16 = vsyncpa [#allocation5 + $0x1], 0  ;;  %s933_s21 = smov 0   ;;  %s935_s22 = smov 0  }
   0x6   :  { %s937_s23 = smov 0   ;;  %s939_s24 = smov 0  }
   0x7   :  { %s941_s25 = smov 0   ;;  %s943_s26 = smov 0  }
   0x8 LB: > { %s685_s27 = sadd.s32 4294967295, %s890_s26   ;;  %s34_s28 = sadd.s32 1, %s886_s25  ;;  %s890_s26 = sphi %s943_s26, %s22_s26   ;;  %s886_s25 = sphi %s941_s25, %s1114_s25   ;;  %s882_s24 = sphi %s939_s24, %s1113_s24   ;;  %s878_s23 = sphi %s937_s23, %s1112_s23   ;;  %s874_s22 = sphi %s935_s22, %s1111_s22   ;;  %s870_s21 = sphi %s933_s21, %s1110_s21  }
   0x9   : > { %p36_p0 = scmp.ge.s32.totalorder %s34_s28, 2  ;;  %s43_s29 = sadd.s32 1, %s878_s23 }
   0xa   : > { %p50_p1 = scmp.ne.s32.totalorder %s878_s23, %s874_s22  ;;  %p51_p2 = scmp.eq.s32.totalorder %s890_s26, 0 }
   0xb   : > { %s1116_s28 = smov (%p36_p0, %s34_s28), 0  ;;  %p56_p4 = scmp.ne.s32.totalorder %s874_s22, %s870_s21 }
   0xc   : > { %p969_p3 = por %p51_p2, %p50_p1  ;;  %s38_s7 = ssub.s32 %s886_s25, %s1116_s28 }
   0xd   : > { %p57_p5 = scmp.eq.s32.totalorder %s685_s27, 0  ;;  %p41_p6 = scmp.eq.s32.totalorder %s38_s7, 0 }
   0xe   : > { %p718_p8 = scmp.lt.s32.totalorder %s890_s26, 2  ;;  %s985_s10 = sand.u32 1, %s878_s23  }
   0xf   : > { %p976_p7 = por %p57_p5, %p56_p4  ;;  %s704_s11 = sshll.u32 %s886_s25, 10 }
  0x10   : > { %s982_s9 = scalar_select %p41_p6, %s878_s23, %s43_s29  }
  0x11   : > { %s689_s12 = sshll.u32 %s985_s10, 6  ;;  %s1107_s0 = sld [smem:[#allocation8_spill]] }
  0x12   : > { %s236_s16 = scalar_lea.vmem [#allocation2], %s689_s12  ;;  %p996_p9 = pnand %p718_p8, %p969_p3 }
  0x13   : > { %s245_s17 = sshll.u32 %s236_s16, 4  ;;  %s233_s19 = scalar_lea.sflag [#allocation3], %s985_s10  ;;  %s246_s17 = int_to_ptr.vmem [resolvable:$true] %s245_s17 }
  0x14   : > { %p782_p10 = pneg %p996_p9  ;;  %s793_s20 = scalar_lea.vmem %s246_s17, 1024 }
  0x15   : > { %p794_p11 = scmp.ne.s32.totalorder %s246_s17, %s793_s20  ;;  %s892_s21 = smov [#allocation2]  }
  0x16   : > { %s798_s27 = sshll.u32 %s892_s21, 4  ;;  %s799_s27 = int_to_ptr.vmem [resolvable:$false] %s798_s27 }
  0x17   : > { %s244_s15 = scalar_lea.hbm %s1107_s0, %s704_s11  ;;  %p796_p12 = pnand %p794_p11, %p782_p10 }
  0x18   : > { %s800_s29 = scalar_lea.vmem %s799_s27, 2048  ;;  %p801_p0 = scmp.lt.s32.totalorder %s246_s17, %s799_s27 }
  0x19   : > { %p797_p13 = pneg %p796_p12  ;;  %p802_p1 = scmp.lt.s32.totalorder %s800_s29, %s793_s20 }
  0x1b   : > { %p803_p2 = por %p802_p1, %p801_p0 }
  0x1d   : > { %p804_p3 = pnand %p803_p2, %p797_p13 }
  0x1f   : > { %807 = shalt.err (!%p804_p3)
}
  0x20   : > { %s893_s30 = smov 256   ;;  %s894_s7 = smov 16  }
  0x21   : > { %714 = dma.hbm_to_vmem [thread:$0]  (!%p996_p9), %s244_s15, 1024, %s246_s17, %s233_s19, %s893_s30, %s893_s30, %s894_s7  }
  0x22   : > { %p695_p4 = scmp.ge.s32.totalorder %s890_s26, 1  ;;  %p276_p5 = scmp.lt.s32.totalorder %s890_s26, 3 }
  0x23   : > { %s267_s20 = scalar_lea.hbm %s1098_s1, %s704_s11  ;;  %s259_s21 = scalar_lea.vmem [#allocation4], %s689_s12 }
  0x24   : > { %p1010_p6 = pnand %p695_p4, %p276_p5  ;;  %s268_s27 = sshll.u32 %s259_s21, 4  ;;  %s269_s27 = int_to_ptr.vmem [resolvable:$true] %s268_s27 }
  0x25   : > { %s256_s29 = scalar_lea.sflag [#allocation5], %s985_s10  ;;  %s821_s0 = scalar_lea.vmem %s269_s27, 1024 }
  0x26   : > { %p822_p8 = scmp.ne.s32.totalorder %s269_s27, %s821_s0  ;;  %s895_s15 = smov [#allocation4]  }
  0x27   : > { %s826_s17 = sshll.u32 %s895_s15, 4  ;;  %s827_s17 = int_to_ptr.vmem [resolvable:$false] %s826_s17 }
  0x28   : > { %p824_p11 = pnand %p822_p8, %p782_p10  ;;  %s828_s19 = scalar_lea.vmem %s827_s17, 2048 }
  0x29   : > { %p829_p13 = scmp.lt.s32.totalorder %s269_s27, %s827_s17  ;;  %p830_p0 = scmp.lt.s32.totalorder %s828_s19, %s821_s0 }
  0x2a   : > { %p825_p12 = pneg %p824_p11 }
  0x2b   : > { %p831_p1 = por %p830_p0, %p829_p13 }
  0x2d   : > { %p832_p2 = pnand %p831_p1, %p825_p12 }
  0x2f   : > { %835 = shalt.err (!%p832_p2)
}
  0x30   : > { %717 = dma.hbm_to_vmem [thread:$0]  (!%p996_p9), %s267_s20, 1024, %s269_s27, %s256_s29, %s893_s30, %s893_s30, %s894_s7  }
  0x31   : > { %280 = sbr.rel (%p1010_p6) target bundleno = 325 (0x145), region = 44  ;;  %s282_s10 = sand.u32 (!%p1010_p6), 1, %s874_s22  }
  0x32   : > { %s696_s11 = sshll.u32 (!%p1010_p6), %s282_s10, 6  ;;  %s283_s12 = scalar_lea.sflag (!%p1010_p6), [#allocation3], %s282_s10 }
  0x33   : > { %s1028_s14 = scalar_lea.vmem (!%p1010_p6), [#allocation2], %s696_s11 }
  0x36   : > { %861 = dma.done.wait (%p976_p7), %s283_s12, 1024  }
  0x37   : > { %863 = vsyncadd (%p976_p7), %s283_s12, 4294966272  ;;  %s292_s0 = scalar_lea.sflag [#allocation5], %s282_s10  ;;  %s1034_s16 = scalar_lea.vmem [#allocation4], %s696_s11 }
  0x38   : > { %865 = dma.done.wait (%p976_p7), %s292_s0, 1024  }
  0x39   : > { %867 = vsyncadd (%p976_p7), %s292_s0, 4294966272  ;;  %v896_v0 = vmov 0.0   ;;  %v897_v1 = vmov 0   ;;  %v352_v2 = vld [vmem:[%s1028_s14 + $0x38] sm:$0xff]  ;;  %v351_v4 = vld [vmem:[%s1028_s14 + $0x30] sm:$0xff]  ;;  %vm360_vm0 = vcmask 261120  }
  0x3a   : > { %428 = vmatprep.mubr.f32.mxu0 %v896_v0  ;;  %555 = vmatprep.mubr.f32.mxu1 %v896_v0  ;;  %v480_v3 = vld [vmem:[%s1034_s16 + $0x38] sm:$0xff]  ;;  %v479_v5 = vld [vmem:[%s1034_s16 + $0x30] sm:$0xff]  ;;  %v350_v6 = vld [vmem:[%s1028_s14 + $0x28] sm:$0xff]  ;;  %p336_p7 = scmp.lt.s32.totalorder %s882_s24, 1 }
  0x3b   : > { %771 = vset.pattern.permute.xlu0 %v897_v1  ;;  %388 = vmatprep.subr.mxu0 %v352_v2  ;;  %v478_v7 = vld [vmem:[%s1034_s16 + $0x28] sm:$0xff]  ;;  %v349_v8 = vld [vmem:[%s1028_s14 + $0x20] sm:$0xff]  ;;  %v348_v10 = vld [vmem:[%s1028_s14 + $0x18] sm:$0xff] }
  0x3c   : > { %515 = vmatprep.subr.mxu1 %v480_v3  ;;  %389 = vmatpush1.msra.mxu0 %v351_v4  ;;  %v477_v9 = vld [vmem:[%s1034_s16 + $0x20] sm:$0xff]  ;;  %v476_v11 = vld [vmem:[%s1034_s16 + $0x18] sm:$0xff]  ;;  %v347_v12 = vld [vmem:[%s1028_s14 + $0x10] sm:$0xff]  ;;  %s1118_s24 = smov (!%p336_p7, %s882_s24), 1 }
  0x3d   : > { %516 = vmatpush1.msra.mxu1 %v479_v5  ;;  %390 = vmatprep.subr.mxu0 %v350_v6  ;;  %v475_v13 = vld [vmem:[%s1034_s16 + $0x10] sm:$0xff]  ;;  %v346_v14 = vld [vmem:[%s1028_s14 + $0x8] sm:$0xff]  ;;  %v345_v16 = vld [vmem:[%s1028_s14] sm:$0xff]  ;;  %s706_s29 = sshll.u32 %s1118_s24, 5 }
  0x3e   : > { %517 = vmatprep.subr.mxu1 %v478_v7  ;;  %391 = vmatpush1.msra.mxu0 %v349_v8  ;;  %v474_v15 = vld [vmem:[%s1034_s16 + $0x8] sm:$0xff]  ;;  %v473_v17 = vld [vmem:[%s1034_s16] sm:$0xff]  ;;  %s1073_s19 = scalar_lea.vmem %s1103_s6, %s706_s29 }
  0x3f   : > { %518 = vmatpush1.msra.mxu1 %v477_v9  ;;  %392 = vmatprep.subr.mxu0 %v348_v10  ;;  %v353_v18 = vld [vmem:[%s1099_s2] sm:$0xff] }
  0x40   : > { %519 = vmatprep.subr.mxu1 %v476_v11  ;;  %393 = vmatpush1.msra.mxu0 %v347_v12  ;;  %v481_v19 = vld [vmem:[%s1101_s4] sm:$0x3] }
  0x41   : > { %520 = vmatpush1.msra.mxu1 %v475_v13  ;;  %394 = vmatprep.subr.mxu0 %v346_v14  ;;  %v354_v20 = vld [vmem:[%s1100_s3] sm:$0xff] }
  0x42   : > { %521 = vmatprep.subr.mxu1 %v474_v15  ;;  %395 = vmatpush1.msra.mxu0 %v345_v16  ;;  %v482_v21 = vld [vmem:[%s1102_s5] sm:$0x3] }
  0x43   : > { %522 = vmatpush1.msra.mxu1 %v473_v17  ;;  %700 = vmatmul.mubr.msk.f32.vlgmr.msra.gmra.mxu0 %vm360_vm0, %v353_v18 }
  0x44   : > { %701 = vmatmul.mubr.msk.f32.vlgmr.msra.gmra.mxu1 %vm360_vm0, %v481_v19  ;;  %357 = vperm.xlu0 %771, %v354_v20  }
  0x48   : > { %485 = vperm.xlu0 %771, %v482_v21  }
  0xbf   : > { %v358_v22 = vpop.permute.xlu0 %357 }
  0xc3   : > { %v486_v23 = vpop.permute.xlu0 %485 }
 0x103   : > { %v430_v24 = vpop.f32.mrf.mxu0 }
 0x104   : > { %v557_v25 = vpop.f32.mrf.mxu1  ;;  %v431_v26 = vadd.f32 %v430_v24, %v358_v22 }
 0x105   : > { %v558_v27 = vadd.f32 %v557_v25, %v486_v23  ;;  %v432_v29 = vpop.f32.mrf.mxu0 }
 0x106   : > { %v559_v28 = vpop.f32.mrf.mxu1  ;;  %v435_v30 = vrot.slane %v431_v26, 4  ;;  %v433_v32 = vadd.f32 %v432_v29, %v358_v22 }
 0x107   : > { %v560_v31 = vadd.f32 %v559_v28, %v486_v23  ;;  %562 = vst [vmem:[%s1073_s19 + $0x10] sm:$0x3] %v558_v27 }
 0x108   : > { %v436_v33 = vmax.f32 %v431_v26, %v435_v30  ;;  %v441_v34 = vrot.slane %v433_v32, 4 }
 0x109   : > { %563 = vst [vmem:[%s1073_s19 + $0x18] sm:$0x3] %v560_v31 }
 0x10a   : > { %v437_v35 = vrot.slane %v436_v33, 2  ;;  %v442_v36 = vmax.f32 %v433_v32, %v441_v34 }
 0x10c   : > { %v438_v37 = vmax.f32 %v436_v33, %v437_v35  ;;  %v443_v38 = vrot.slane %v442_v36, 2 }
 0x10e   : > { %v439_v39 = vrot.slane %v438_v37, 1  ;;  %v444_v40 = vmax.f32 %v442_v36, %v443_v38 }
 0x110   : > { %v440_v41 = vmax.f32 %v438_v37, %v439_v39  ;;  %v445_v42 = vrot.slane %v444_v40, 1 }
 0x112   : > { %v447_v43 = vsub.f32 %v431_v26, %v440_v41  ;;  %v446_v44 = vmax.f32 %v444_v40, %v445_v42 }
 0x114   : > { %v449_v45 = vmul.f32 1.442695, %v447_v43  ;;  %v448_v46 = vsub.f32 %v433_v32, %v446_v44 }
 0x116   : > { %772 = vpow2.f32 %v449_v45  ;;  %v451_v47 = vmul.f32 1.442695, %v448_v46 }
 0x118   : > { %774 = vpow2.f32 %v451_v47 }
 0x123   : > { %v773_v48 = vpop.eup %772 }
 0x124   : > { %v453_v49 = vrot.slane %v773_v48, 4 }
 0x125   : > { %v775_v50 = vpop.eup %774 }
 0x126   : > { %v454_v51 = vadd.f32 %v773_v48, %v453_v49  ;;  %v459_v52 = vrot.slane %v775_v50, 4 }
 0x128   : > { %v455_v53 = vrot.slane %v454_v51, 2  ;;  %v460_v54 = vadd.f32 %v775_v50, %v459_v52 }
 0x12a   : > { %v456_v55 = vadd.f32 %v455_v53, %v454_v51  ;;  %v461_v56 = vrot.slane %v460_v54, 2 }
 0x12c   : > { %v457_v57 = vrot.slane %v456_v55, 1  ;;  %v462_v58 = vadd.f32 %v461_v56, %v460_v54 }
 0x12e   : > { %v458_v59 = vadd.f32 %v457_v57, %v456_v55  ;;  %v463_v60 = vrot.slane %v462_v58, 1 }
 0x130   : > { %776 = vlog2.f32 %v458_v59  ;;  %v464_v61 = vadd.f32 %v463_v60, %v462_v58 }
 0x132   : > { %778 = vlog2.f32 %v464_v61 }
 0x13d   : > { %v777_v62 = vpop.eup %776 }
 0x13e   : > { %v466_v63 = vmul.f32 0.6931472, %v777_v62 }
 0x13f   : > { %v779_v0 = vpop.eup %778 }
 0x140   : > { %v469_v1 = vsub.f32 %v447_v43, %v466_v63  ;;  %v468_v2 = vmul.f32 0.6931472, %v779_v0 }
 0x142   : > { %471 = vst [vmem:[%s1073_s19] sm:$0xff] %v469_v1  ;;  %v470_v3 = vsub.f32 %v448_v46, %v468_v2 }
 0x144   : > { %472 = vst [vmem:[%s1073_s19 + $0x8] sm:$0xff] %v470_v3 }
 0x145 PF: > { %s22_s26 = sadd.s32 1, %s890_s26   ;;  %s1110_s21 = smov %s874_s22 }
 0x146   : > { %p19_p9 = scmp.ge.s32.totalorder %s22_s26, 4   ;;  %s1111_s22 = smov %s878_s23 }
 0x147   : > { %s1112_s23 = smov %s982_s9  ;;  %s1113_s24 = smov %s886_s25 }
 0x148   : > { %s1114_s25 = smov %s1116_s28  ;;  %21 = sbr.rel (!%p19_p9) target bundleno = 8 (0x8), region = 97 }
 0x14d   :  { %594 = vsyncpa [#allocation3], 1 }
 0x14e   :  { %596 = vsyncpa [#allocation3 + $0x1], 1 }
 0x14f   :  { %597 = vsyncpa [#allocation5], 1 }
 0x150   :  { %599 = vsyncpa [#allocation5 + $0x1], 1 }

// kernel: tpu_custom_call.1
= control target key start
LH: loop header
LB: loop body
LE: loop exit
PB: predicated region body
PF: predicated region fallthrough
CT: control target
= control target key end

     0   :  { %s1097_s0 = inlined_call_operand.hbm [shape: f32[2,32,256], index: 0, kind: input, shape index: {}]   ;;  %s1098_s1 = inlined_call_operand.hbm [shape: f32[2,32,256], index: 1, kind: input, shape index: {}]   ;;  %s1099_s2 = inlined_call_operand.vmem [shape: f32[8,32], index: 2, kind: input, shape index: {}]   ;;  %s1100_s3 = inlined_call_operand.vmem [shape: f32[8,1], index: 3, kind: input, shape index: {}]   ;;  %s1101_s4 = inlined_call_operand.vmem [shape: f32[2,32], index: 4, kind: input, shape index: {}]   ;;  %s1102_s5 = inlined_call_operand.vmem [shape: f32[2,1], index: 5, kind: input, shape index: {}]   ;;  %s1103_s6 = inlined_call_operand.vmem [shape: f32[2,10,256], index: 6, kind: output, shape index: {}]  }
   0x1   :  { %1104 = sst [smem:[#allocation8_spill]] %s1097_s0 }
   0x2   :  { %11 = vsyncpa [#allocation3], 0 }
   0x3   :  { %13 = vsyncpa [#allocation3 + $0x1], 0 }
   0x4   :  { %14 = vsyncpa [#allocation5], 0 }
   0x5   :  { %16 = vsyncpa [#allocation5 + $0x1], 0  ;;  %s933_s21 = smov 0   ;;  %s935_s22 = smov 0  }
   0x6   :  { %s937_s23 = smov 0   ;;  %s939_s24 = smov 0  }
   0x7   :  { %s941_s25 = smov 0   ;;  %s943_s26 = smov 0  }
   0x8 LB: > { %s685_s27 = sadd.s32 4294967295, %s890_s26   ;;  %s34_s28 = sadd.s32 1, %s886_s25  ;;  %s890_s26 = sphi %s943_s26, %s22_s26   ;;  %s886_s25 = sphi %s941_s25, %s1114_s25   ;;  %s882_s24 = sphi %s939_s24, %s1113_s24   ;;  %s878_s23 = sphi %s937_s23, %s1112_s23   ;;  %s874_s22 = sphi %s935_s22, %s1111_s22   ;;  %s870_s21 = sphi %s933_s21, %s1110_s21  }
   0x9   : > { %p36_p0 = scmp.ge.s32.totalorder %s34_s28, 2  ;;  %s43_s29 = sadd.s32 1, %s878_s23 }
   0xa   : > { %p50_p1 = scmp.ne.s32.totalorder %s878_s23, %s874_s22  ;;  %p51_p2 = scmp.eq.s32.totalorder %s890_s26, 0 }
   0xb   : > { %s1116_s28 = smov (%p36_p0, %s34_s28), 0  ;;  %p56_p4 = scmp.ne.s32.totalorder %s874_s22, %s870_s21 }
   0xc   : > { %p969_p3 = por %p51_p2, %p50_p1  ;;  %s38_s7 = ssub.s32 %s886_s25, %s1116_s28 }
   0xd   : > { %p57_p5 = scmp.eq.s32.totalorder %s685_s27, 0  ;;  %p41_p6 = scmp.eq.s32.totalorder %s38_s7, 0 }
   0xe   : > { %p718_p8 = scmp.lt.s32.totalorder %s890_s26, 2  ;;  %s985_s10 = sand.u32 1, %s878_s23  }
   0xf   : > { %p976_p7 = por %p57_p5, %p56_p4  ;;  %s704_s11 = sshll.u32 %s886_s25, 10 }
  0x10   : > { %s982_s9 = scalar_select %p41_p6, %s878_s23, %s43_s29  }
  0x11   : > { %s689_s12 = sshll.u32 %s985_s10, 6  ;;  %s1107_s0 = sld [smem:[#allocation8_spill]] }
  0x12   : > { %s236_s16 = scalar_lea.vmem [#allocation2], %s689_s12  ;;  %p996_p9 = pnand %p718_p8, %p969_p3 }
  0x13   : > { %s245_s17 = sshll.u32 %s236_s16, 4  ;;  %s233_s19 = scalar_lea.sflag [#allocation3], %s985_s10  ;;  %s246_s17 = int_to_ptr.vmem [resolvable:$true] %s245_s17 }
  0x14   : > { %p782_p10 = pneg %p996_p9  ;;  %s793_s20 = scalar_lea.vmem %s246_s17, 1024 }
  0x15   : > { %p794_p11 = scmp.ne.s32.totalorder %s246_s17, %s793_s20  ;;  %s892_s21 = smov [#allocation2]  }
  0x16   : > { %s798_s27 = sshll.u32 %s892_s21, 4  ;;  %s799_s27 = int_to_ptr.vmem [resolvable:$false] %s798_s27 }
  0x17   : > { %s244_s15 = scalar_lea.hbm %s1107_s0, %s704_s11  ;;  %p796_p12 = pnand %p794_p11, %p782_p10 }
  0x18   : > { %s800_s29 = scalar_lea.vmem %s799_s27, 2048  ;;  %p801_p0 = scmp.lt.s32.totalorder %s246_s17, %s799_s27 }
  0x19   : > { %p797_p13 = pneg %p796_p12  ;;  %p802_p1 = scmp.lt.s32.totalorder %s800_s29, %s793_s20 }
  0x1b   : > { %p803_p2 = por %p802_p1, %p801_p0 }
  0x1d   : > { %p804_p3 = pnand %p803_p2, %p797_p13 }
  0x1f   : > { %807 = shalt.err (!%p804_p3)
}
  0x20   : > { %s893_s30 = smov 256   ;;  %s894_s7 = smov 16  }
  0x21   : > { %714 = dma.hbm_to_vmem [thread:$0]  (!%p996_p9), %s244_s15, 1024, %s246_s17, %s233_s19, %s893_s30, %s893_s30, %s894_s7  }
  0x22   : > { %p695_p4 = scmp.ge.s32.totalorder %s890_s26, 1  ;;  %p276_p5 = scmp.lt.s32.totalorder %s890_s26, 3 }
  0x23   : > { %s267_s20 = scalar_lea.hbm %s1098_s1, %s704_s11  ;;  %s259_s21 = scalar_lea.vmem [#allocation4], %s689_s12 }
  0x24   : > { %p1010_p6 = pnand %p695_p4, %p276_p5  ;;  %s268_s27 = sshll.u32 %s259_s21, 4  ;;  %s269_s27 = int_to_ptr.vmem [resolvable:$true] %s268_s27 }
  0x25   : > { %s256_s29 = scalar_lea.sflag [#allocation5], %s985_s10  ;;  %s821_s0 = scalar_lea.vmem %s269_s27, 1024 }
  0x26   : > { %p822_p8 = scmp.ne.s32.totalorder %s269_s27, %s821_s0  ;;  %s895_s15 = smov [#allocation4]  }
  0x27   : > { %s826_s17 = sshll.u32 %s895_s15, 4  ;;  %s827_s17 = int_to_ptr.vmem [resolvable:$false] %s826_s17 }
  0x28   : > { %p824_p11 = pnand %p822_p8, %p782_p10  ;;  %s828_s19 = scalar_lea.vmem %s827_s17, 2048 }
  0x29   : > { %p829_p13 = scmp.lt.s32.totalorder %s269_s27, %s827_s17  ;;  %p830_p0 = scmp.lt.s32.totalorder %s828_s19, %s821_s0 }
  0x2a   : > { %p825_p12 = pneg %p824_p11 }
  0x2b   : > { %p831_p1 = por %p830_p0, %p829_p13 }
  0x2d   : > { %p832_p2 = pnand %p831_p1, %p825_p12 }
  0x2f   : > { %835 = shalt.err (!%p832_p2)
}
  0x30   : > { %717 = dma.hbm_to_vmem [thread:$0]  (!%p996_p9), %s267_s20, 1024, %s269_s27, %s256_s29, %s893_s30, %s893_s30, %s894_s7  }
  0x31   : > { %280 = sbr.rel (%p1010_p6) target bundleno = 325 (0x145), region = 44  ;;  %s282_s10 = sand.u32 (!%p1010_p6), 1, %s874_s22  }
  0x32   : > { %s696_s11 = sshll.u32 (!%p1010_p6), %s282_s10, 6  ;;  %s283_s12 = scalar_lea.sflag (!%p1010_p6), [#allocation3], %s282_s10 }
  0x33   : > { %s1028_s14 = scalar_lea.vmem (!%p1010_p6), [#allocation2], %s696_s11 }
  0x36   : > { %861 = dma.done.wait (%p976_p7), %s283_s12, 1024  }
  0x37   : > { %863 = vsyncadd (%p976_p7), %s283_s12, 4294966272  ;;  %s292_s0 = scalar_lea.sflag [#allocation5], %s282_s10  ;;  %s1034_s16 = scalar_lea.vmem [#allocation4], %s696_s11 }
  0x38   : > { %865 = dma.done.wait (%p976_p7), %s292_s0, 1024  }
  0x39   : > { %867 = vsyncadd (%p976_p7), %s292_s0, 4294966272  ;;  %v896_v0 = vmov 0.0   ;;  %v897_v1 = vmov 0   ;;  %v352_v2 = vld [vmem:[%s1028_s14 + $0x38] sm:$0xff]  ;;  %v351_v4 = vld [vmem:[%s1028_s14 + $0x30] sm:$0xff]  ;;  %vm360_vm0 = vcmask 261120  }
  0x3a   : > { %428 = vmatprep.mubr.f32.mxu0 %v896_v0  ;;  %555 = vmatprep.mubr.f32.mxu1 %v896_v0  ;;  %v480_v3 = vld [vmem:[%s1034_s16 + $0x38] sm:$0xff]  ;;  %v479_v5 = vld [vmem:[%s1034_s16 + $0x30] sm:$0xff]  ;;  %v350_v6 = vld [vmem:[%s1028_s14 + $0x28] sm:$0xff]  ;;  %p336_p7 = scmp.lt.s32.totalorder %s882_s24, 1 }
  0x3b   : > { %771 = vset.pattern.permute.xlu0 %v897_v1  ;;  %388 = vmatprep.subr.mxu0 %v352_v2  ;;  %v478_v7 = vld [vmem:[%s1034_s16 + $0x28] sm:$0xff]  ;;  %v349_v8 = vld [vmem:[%s1028_s14 + $0x20] sm:$0xff]  ;;  %v348_v10 = vld [vmem:[%s1028_s14 + $0x18] sm:$0xff] }
  0x3c   : > { %515 = vmatprep.subr.mxu1 %v480_v3  ;;  %389 = vmatpush1.msra.mxu0 %v351_v4  ;;  %v477_v9 = vld [vmem:[%s1034_s16 + $0x20] sm:$0xff]  ;;  %v476_v11 = vld [vmem:[%s1034_s16 + $0x18] sm:$0xff]  ;;  %v347_v12 = vld [vmem:[%s1028_s14 + $0x10] sm:$0xff]  ;;  %s1118_s24 = smov (!%p336_p7, %s882_s24), 1 }
  0x3d   : > { %516 = vmatpush1.msra.mxu1 %v479_v5  ;;  %390 = vmatprep.subr.mxu0 %v350_v6  ;;  %v475_v13 = vld [vmem:[%s1034_s16 + $0x10] sm:$0xff]  ;;  %v346_v14 = vld [vmem:[%s1028_s14 + $0x8] sm:$0xff]  ;;  %v345_v16 = vld [vmem:[%s1028_s14] sm:$0xff]  ;;  %s706_s29 = sshll.u32 %s1118_s24, 5 }
  0x3e   : > { %517 = vmatprep.subr.mxu1 %v478_v7  ;;  %391 = vmatpush1.msra.mxu0 %v349_v8  ;;  %v474_v15 = vld [vmem:[%s1034_s16 + $0x8] sm:$0xff]  ;;  %v473_v17 = vld [vmem:[%s1034_s16] sm:$0xff]  ;;  %s1073_s19 = scalar_lea.vmem %s1103_s6, %s706_s29 }
  0x3f   : > { %518 = vmatpush1.msra.mxu1 %v477_v9  ;;  %392 = vmatprep.subr.mxu0 %v348_v10  ;;  %v353_v18 = vld [vmem:[%s1099_s2] sm:$0xff] }
  0x40   : > { %519 = vmatprep.subr.mxu1 %v476_v11  ;;  %393 = vmatpush1.msra.mxu0 %v347_v12  ;;  %v481_v19 = vld [vmem:[%s1101_s4] sm:$0x3] }
  0x41   : > { %520 = vmatpush1.msra.mxu1 %v475_v13  ;;  %394 = vmatprep.subr.mxu0 %v346_v14  ;;  %v354_v20 = vld [vmem:[%s1100_s3] sm:$0xff] }
  0x42   : > { %521 = vmatprep.subr.mxu1 %v474_v15  ;;  %395 = vmatpush1.msra.mxu0 %v345_v16  ;;  %v482_v21 = vld [vmem:[%s1102_s5] sm:$0x3] }
  0x43   : > { %522 = vmatpush1.msra.mxu1 %v473_v17  ;;  %700 = vmatmul.mubr.msk.f32.vlgmr.msra.gmra.mxu0 %vm360_vm0, %v353_v18 }
  0x44   : > { %701 = vmatmul.mubr.msk.f32.vlgmr.msra.gmra.mxu1 %vm360_vm0, %v481_v19  ;;  %357 = vperm.xlu0 %771, %v354_v20  }
  0x48   : > { %485 = vperm.xlu0 %771, %v482_v21  }
  0xbf   : > { %v358_v22 = vpop.permute.xlu0 %357 }
  0xc3   : > { %v486_v23 = vpop.permute.xlu0 %485 }
 0x103   : > { %v430_v24 = vpop.f32.mrf.mxu0 }
 0x104   : > { %v557_v25 = vpop.f32.mrf.mxu1  ;;  %v431_v26 = vadd.f32 %v430_v24, %v358_v22 }
 0x105   : > { %v558_v27 = vadd.f32 %v557_v25, %v486_v23  ;;  %v432_v29 = vpop.f32.mrf.mxu0 }
 0x106   : > { %v559_v28 = vpop.f32.mrf.mxu1  ;;  %v435_v30 = vrot.slane %v431_v26, 4  ;;  %v433_v32 = vadd.f32 %v432_v29, %v358_v22 }
 0x107   : > { %v560_v31 = vadd.f32 %v559_v28, %v486_v23  ;;  %562 = vst [vmem:[%s1073_s19 + $0x10] sm:$0x3] %v558_v27 }
 0x108   : > { %v436_v33 = vmax.f32 %v431_v26, %v435_v30  ;;  %v441_v34 = vrot.slane %v433_v32, 4 }
 0x109   : > { %563 = vst [vmem:[%s1073_s19 + $0x18] sm:$0x3] %v560_v31 }
 0x10a   : > { %v437_v35 = vrot.slane %v436_v33, 2  ;;  %v442_v36 = vmax.f32 %v433_v32, %v441_v34 }
 0x10c   : > { %v438_v37 = vmax.f32 %v436_v33, %v437_v35  ;;  %v443_v38 = vrot.slane %v442_v36, 2 }
 0x10e   : > { %v439_v39 = vrot.slane %v438_v37, 1  ;;  %v444_v40 = vmax.f32 %v442_v36, %v443_v38 }
 0x110   : > { %v440_v41 = vmax.f32 %v438_v37, %v439_v39  ;;  %v445_v42 = vrot.slane %v444_v40, 1 }
 0x112   : > { %v447_v43 = vsub.f32 %v431_v26, %v440_v41  ;;  %v446_v44 = vmax.f32 %v444_v40, %v445_v42 }
 0x114   : > { %v449_v45 = vmul.f32 1.442695, %v447_v43  ;;  %v448_v46 = vsub.f32 %v433_v32, %v446_v44 }
 0x116   : > { %772 = vpow2.f32 %v449_v45  ;;  %v451_v47 = vmul.f32 1.442695, %v448_v46 }
 0x118   : > { %774 = vpow2.f32 %v451_v47 }
 0x123   : > { %v773_v48 = vpop.eup %772 }
 0x124   : > { %v453_v49 = vrot.slane %v773_v48, 4 }
 0x125   : > { %v775_v50 = vpop.eup %774 }
 0x126   : > { %v454_v51 = vadd.f32 %v773_v48, %v453_v49  ;;  %v459_v52 = vrot.slane %v775_v50, 4 }
 0x128   : > { %v455_v53 = vrot.slane %v454_v51, 2  ;;  %v460_v54 = vadd.f32 %v775_v50, %v459_v52 }
 0x12a   : > { %v456_v55 = vadd.f32 %v455_v53, %v454_v51  ;;  %v461_v56 = vrot.slane %v460_v54, 2 }
 0x12c   : > { %v457_v57 = vrot.slane %v456_v55, 1  ;;  %v462_v58 = vadd.f32 %v461_v56, %v460_v54 }
 0x12e   : > { %v458_v59 = vadd.f32 %v457_v57, %v456_v55  ;;  %v463_v60 = vrot.slane %v462_v58, 1 }
 0x130   : > { %776 = vlog2.f32 %v458_v59  ;;  %v464_v61 = vadd.f32 %v463_v60, %v462_v58 }
 0x132   : > { %778 = vlog2.f32 %v464_v61 }
 0x13d   : > { %v777_v62 = vpop.eup %776 }
 0x13e   : > { %v466_v63 = vmul.f32 0.6931472, %v777_v62 }
 0x13f   : > { %v779_v0 = vpop.eup %778 }
 0x140   : > { %v469_v1 = vsub.f32 %v447_v43, %v466_v63  ;;  %v468_v2 = vmul.f32 0.6931472, %v779_v0 }
 0x142   : > { %471 = vst [vmem:[%s1073_s19] sm:$0xff] %v469_v1  ;;  %v470_v3 = vsub.f32 %v448_v46, %v468_v2 }
 0x144   : > { %472 = vst [vmem:[%s1073_s19 + $0x8] sm:$0xff] %v470_v3 }
 0x145 PF: > { %s22_s26 = sadd.s32 1, %s890_s26   ;;  %s1110_s21 = smov %s874_s22 }
 0x146   : > { %p19_p9 = scmp.ge.s32.totalorder %s22_s26, 4   ;;  %s1111_s22 = smov %s878_s23 }
 0x147   : > { %s1112_s23 = smov %s982_s9  ;;  %s1113_s24 = smov %s886_s25 }
 0x148   : > { %s1114_s25 = smov %s1116_s28  ;;  %21 = sbr.rel (!%p19_p9) target bundleno = 8 (0x8), region = 97 }
 0x14d   :  { %594 = vsyncpa [#allocation3], 1 }
 0x14e   :  { %596 = vsyncpa [#allocation3 + $0x1], 1 }
 0x14f   :  { %597 = vsyncpa [#allocation5], 1 }
 0x150   :  { %599 = vsyncpa [#allocation5 + $0x1], 1 }

</bundles_post_ra>
